<compile_context>
chip_gen: v6e
topology: v6e:2x2x1
jax: 0.10.0
libtpu: 0.0.40
codegen_flags: <defaults>
</compile_context>

<pallas_src>
import functools

import jax
import jax.numpy as jnp
from jax.experimental import pallas as pl
from jax.experimental.pallas import tpu as pltpu


def _round_up(x: int, m: int) -> int:
    return ((x + m - 1) // m) * m


# ---------------------------------------------------------------------------
# Constant construction (plain JAX, deterministic, cached per config)
# ---------------------------------------------------------------------------
def _hann_window(n_fft: int) -> jnp.ndarray:
    # matches torch.hann_window(n_fft) (periodic=True)
    k = jnp.arange(n_fft, dtype=jnp.float32)
    return 0.5 - 0.5 * jnp.cos(2.0 * jnp.pi * k / n_fft)


def _mel_filterbank(sample_rate: int, n_fft: int, n_mels: int) -> jnp.ndarray:
    # TODO(synk): torch.functional.mel_filters is not a real PyTorch API; a
    # deterministic HTK-style triangular mel filterbank is used as stand-in.
    n_freq = n_fft // 2 + 1
    f_max = sample_rate / 2.0

    def hz_to_mel(f):
        return 2595.0 * jnp.log10(1.0 + f / 700.0)

    def mel_to_hz(m):
        return 700.0 * (10.0 ** (m / 2595.0) - 1.0)

    m_pts = jnp.linspace(hz_to_mel(0.0), hz_to_mel(f_max), n_mels + 2)
    f_pts = mel_to_hz(m_pts)                      # (n_mels + 2,)
    bins = jnp.linspace(0.0, f_max, n_freq)       # FFT bin center freqs

    lower = f_pts[:-2][:, None]
    center = f_pts[1:-1][:, None]
    upper = f_pts[2:][:, None]
    up = (bins[None, :] - lower) / (center - lower)
    down = (upper - bins[None, :]) / (upper - center)
    fb = jnp.maximum(0.0, jnp.minimum(up, down))  # (n_mels, n_freq)
    return fb.astype(jnp.float32)


@functools.lru_cache(maxsize=None)
def _make_constants(sample_rate: int, n_fft: int, n_mels: int):
    """Window-folded, exact-n_fft-row DFT basis + row-remapped mel filterbank."""
    n_freq = n_fft // 2 + 1

    window = _hann_window(n_fft)                                 # (n_fft,)
    k = jnp.arange(n_freq, dtype=jnp.float32)[:, None]
    n = jnp.arange(n_fft, dtype=jnp.float32)[None, :]
    ang = 2.0 * jnp.pi * k * n / float(n_fft)                    # (n_freq, n_fft)
    cos_w = jnp.cos(ang) * window[None, :]        # Hann folded into the basis
    sin_w = -jnp.sin(ang) * window[None, :]

    # sin rows for k = 0 (DC) and k = n_fft/2 (Nyquist) are identically zero,
    # so [cos(0..n_freq-1) ; sin(1..n_freq-2)] has exactly n_fft rows.
    basis = jnp.concatenate([cos_w, sin_w[1:n_freq - 1]], axis=0)  # (n_fft, n_fft)
    basis = basis.astype(jnp.bfloat16)

    fb = _mel_filterbank(sample_rate, n_fft, n_mels)               # (n_mels, n_freq)
    # Column-remap to the [cos ; sin] row order above; then
    #   fb2 @ (basis @ frames)**2 == fb @ (real**2 + imag**2)   exactly.
    fb2 = jnp.concatenate([fb, fb[:, 1:n_freq - 1]], axis=1)       # (n_mels, n_fft)
    fb2 = fb2.astype(jnp.bfloat16)                                 # bf16 mel matmul
    return basis, fb2


# ---------------------------------------------------------------------------
# Pallas kernel: one (batch, time-tile) block of the log-mel spectrogram
# ---------------------------------------------------------------------------
def mel_kernel(frames_ref, basis_ref, mel_ref, out_ref):
    # frames_ref : (n_fft, tT)     bf16  (transposed, un-windowed frames)
    # basis_ref  : (n_fft, n_fft)  bf16  (window-folded [cos ; sin] DFT rows)
    # mel_ref    : (n_mels, n_fft) bf16  (row-remapped mel filterbank)
    # out_ref    : (n_mels, tT)    f32
    ri = jnp.dot(basis_ref[...], frames_ref[...],
                 preferred_element_type=jnp.float32)      # (n_fft, tT)
    sq = (ri * ri).astype(jnp.bfloat16)                   # squared spectrum rows
    mel = jnp.dot(mel_ref[...], sq,
                  preferred_element_type=jnp.float32)     # (n_mels, tT)
    out_ref[...] = jnp.log(mel + 1e-9)


# ---------------------------------------------------------------------------
# Wrapper
# ---------------------------------------------------------------------------
def audio_feature_extractor(audio: jnp.ndarray,
                            sample_rate: int = 16000,
                            n_fft: int = 256,
                            hop_length: int = 64,
                            n_mels: int = 32,
                            time_tile: int = 1024) -> jnp.ndarray:
    B, samples = audio.shape
    assert n_fft // 2 < samples, "reflect padding requires samples > n_fft // 2"

    basis, mel_fb = _make_constants(sample_rate, n_fft, n_mels)

    # torch.stft(center=True) frame count
    n_frames = samples // hop_length + 1
    t_pad_min = _round_up(n_frames, 128)
    t_tile = min(_round_up(time_tile, 128), t_pad_min)
    if B == 1 and t_pad_min >= 256:
        # v7x has 2 TensorCores; guarantee >= 2 parallel grid steps.
        t_tile = min(t_tile, _round_up(t_pad_min // 2, 128))
    t_pad = _round_up(n_frames, t_tile)

    # center=True reflect padding, plus trailing zeros so every padded frame
    # (up to t_pad) is in-bounds; padded frames come out as log(1e-9) and are
    # sliced off below.
    pad = n_fft // 2
    x = jnp.pad(audio.astype(jnp.float32), ((0, 0), (pad, pad)), mode="reflect")
    needed = (t_pad - 1) * hop_length + n_fft
    x = jnp.pad(x, ((0, 0), (0, max(0, needed - x.shape[1]))))[:, :needed]

    if n_fft % hop_length == 0:
        # Frame via C = n_fft/hop hop-shifted strided slices (no XLA gather):
        #   frames[b, j*hop + r, t] = x[b, (t + j)*hop + r]
        C = n_fft // hop_length
        chunks = x.reshape(B, t_pad + C - 1, hop_length)
        parts = [jnp.transpose(chunks[:, j:j + t_pad, :], (0, 2, 1))
                 for j in range(C)]
        frames = jnp.concatenate(parts, axis=1).astype(jnp.bfloat16)
    else:
        # Fallback (hop does not divide n_fft): integer gather.
        idx = (jnp.arange(n_fft)[:, None]
               + jnp.arange(t_pad)[None, :] * hop_length)
        frames = x[:, idx].astype(jnp.bfloat16)          # (B, n_fft, t_pad)

    # Per-step VMEM at tT=1024, n_fft=256 is ~2-3 MiB (double-buffered inputs
    # + f32 intermediate) — far below scoped-VMEM defaults on v5e/v6e/v7x, so
    # no vmem_limit_bytes override is needed unless tT >= 8192.
    out = pl.pallas_call(
        mel_kernel,
        out_shape=jax.ShapeDtypeStruct((B, n_mels, t_pad), jnp.float32),
        grid_spec=pltpu.PrefetchScalarGridSpec(
            num_scalar_prefetch=0,
            grid=(B, t_pad // t_tile),
            in_specs=[
                pl.BlockSpec((None, n_fft, t_tile), lambda b, t: (b, 0, t)),
                pl.BlockSpec((n_fft, n_fft), lambda b, t: (0, 0)),
                pl.BlockSpec((n_mels, n_fft), lambda b, t: (0, 0)),
            ],
            out_specs=pl.BlockSpec((None, n_mels, t_tile), lambda b, t: (b, 0, t)),
        ),
        compiler_params=pltpu.CompilerParams(
            dimension_semantics=("parallel", "parallel")),
    )(frames, basis, mel_fb)

    # (B, n_mels, T_pad) -> drop time padding -> unsqueeze(1)
    mel_spec = out[:, :, :n_frames]
    return mel_spec[:, None, :, :]                               # (B, 1, n_mels, T)


if __name__ == "__main__":
    key = jax.random.PRNGKey(0)
    B, samples = 2, 1024
    sample_rate, n_fft, hop, n_mels = 16000, 256, 64, 32
    audio = jax.random.normal(key, (B, samples), dtype=jnp.float32)

    mel = audio_feature_extractor(audio, sample_rate=sample_rate, n_fft=n_fft,
                                  hop_length=hop, n_mels=n_mels)
    mel = jax.block_until_ready(mel)

    expected_T = samples // hop + 1
    assert mel.shape == (B, 1, n_mels, expected_T), mel.shape
    assert bool(jnp.all(jnp.isfinite(mel)))

    # Pure-JAX f32 reference (same framing and stand-in filterbank); loose
    # tolerance accounts for the bf16 MXU operands.
    pad = n_fft // 2
    xr = jnp.pad(audio, ((0, 0), (pad, pad)), mode="reflect")
    idx = jnp.arange(n_fft)[None, :] + jnp.arange(expected_T)[:, None] * hop
    fr = xr[:, idx] * _hann_window(n_fft)[None, None, :]          # (B, T, n_fft)
    kk = jnp.arange(n_fft // 2 + 1, dtype=jnp.float32)[:, None]
    nn = jnp.arange(n_fft, dtype=jnp.float32)[None, :]
    ang = 2.0 * jnp.pi * kk * nn / n_fft
    real = jnp.einsum("btn,fn->bft", fr, jnp.cos(ang))
    imag = jnp.einsum("btn,fn->bft", fr, -jnp.sin(ang))
    fb = _mel_filterbank(sample_rate, n_fft, n_mels)
    ref = jnp.log(jnp.einsum("mf,bft->bmt", fb, real**2 + imag**2) + 1e-9)
    max_err = float(jnp.max(jnp.abs(mel[:, 0] - ref)))
    assert max_err < 0.2, f"max abs log-mel error {max_err}"

    print("KERNEL_OK")
</pallas_src>

<mosaic_0001>
module attributes {stable_mosaic.version = 11 : i64} {
  func.func @mel_kernel(%arg0: i32, %arg1: i32, %arg2: memref<1x256x128xbf16, #tpu.memory_space<vmem>>, %arg3: memref<256x256xbf16, #tpu.memory_space<vmem>>, %arg4: memref<32x256xbf16, #tpu.memory_space<vmem>>, %arg5: memref<1x32x128xf32, #tpu.memory_space<vmem>>) attributes {dimension_semantics = [#tpu.dimension_semantics<parallel>, #tpu.dimension_semantics<parallel>], iteration_bounds = array<i64: 2, 1>, scalar_prefetch = 0 : i64, scratch_operands = 0 : i64, tpu.core_type = #tpu.core_type<tc>, window_params = [{transform_indices = @transform_0, window_bounds = array<i64: 1, 256, 128>}, {pipeline_mode = #tpu.pipeline_mode<synchronous>, transform_indices = @transform_1, window_bounds = array<i64: 256, 256>}, {pipeline_mode = #tpu.pipeline_mode<synchronous>, transform_indices = @transform_2, window_bounds = array<i64: 32, 256>}, {transform_indices = @transform_3, window_bounds = array<i64: 1, 32, 128>}]} {
    %c0 = arith.constant 0 : index
    %c0_0 = arith.constant 0 : index
    %0 = vector.load %arg3[%c0, %c0_0] : memref<256x256xbf16, #tpu.memory_space<vmem>>, vector<256x256xbf16>
    %c0_1 = arith.constant 0 : index
    %c0_2 = arith.constant 0 : index
    %c0_3 = arith.constant 0 : index
    %1 = vector.load %arg2[%c0_1, %c0_2, %c0_3] : memref<1x256x128xbf16, #tpu.memory_space<vmem>>, vector<1x256x128xbf16>
    %2 = vector.shape_cast %1 : vector<1x256x128xbf16> to vector<256x128xbf16>
    %cst = arith.constant dense<0.000000e+00> : vector<256x128xf32>
    %3 = tpu.matmul %0, %2, %cst {dimension_numbers = #tpu.dot_dimension_numbers<[1], [0], [0], [1], [0, 0, 1, 1], [], []>} : vector<256x256xbf16>, vector<256x128xbf16>, vector<256x128xf32> -> vector<256x128xf32>
    %4 = arith.mulf %3, %3 : vector<256x128xf32>
    %5 = arith.truncf %4 : vector<256x128xf32> to vector<256x128xbf16>
    %c0_4 = arith.constant 0 : index
    %c0_5 = arith.constant 0 : index
    %6 = vector.load %arg4[%c0_4, %c0_5] : memref<32x256xbf16, #tpu.memory_space<vmem>>, vector<32x256xbf16>
    %cst_6 = arith.constant dense<0.000000e+00> : vector<32x128xf32>
    %7 = tpu.matmul %6, %5, %cst_6 {dimension_numbers = #tpu.dot_dimension_numbers<[1], [0], [0], [1], [0, 0, 1, 1], [], []>} : vector<32x256xbf16>, vector<256x128xbf16>, vector<32x128xf32> -> vector<32x128xf32>
    %cst_7 = arith.constant 9.99999971E-10 : f32
    %8 = vector.broadcast %cst_7 : f32 to vector<32x128xf32>
    %9 = arith.addf %7, %8 : vector<32x128xf32>
    %10 = math.log %9 : vector<32x128xf32>
    %c0_8 = arith.constant 0 : index
    %c0_9 = arith.constant 0 : index
    %c0_10 = arith.constant 0 : index
    %11 = vector.load %arg5[%c0_8, %c0_9, %c0_10] : memref<1x32x128xf32, #tpu.memory_space<vmem>>, vector<1x32x128xf32>
    %12 = vector.shape_cast %11 : vector<1x32x128xf32> to vector<32x128xf32>
    %13 = vector.shape_cast %10 : vector<32x128xf32> to vector<1x32x128xf32>
    tpu.vector_store %arg5[%c0_8, %c0_9, %c0_10], %13 {strides = array<i32>} : memref<1x32x128xf32, #tpu.memory_space<vmem>>, vector<1x32x128xf32>,
    return
  }
  func.func @transform_0(%arg0: i32, %arg1: i32) -> (i32, i32, i32) {
    %c0_i32 = arith.constant 0 : i32
    %c0_i32_0 = arith.constant 0 : i32
    return %arg0, %c0_i32, %arg1 : i32, i32, i32
  }
  func.func @transform_1(%arg0: i32, %arg1: i32) -> (i32, i32) {
    %c0_i32 = arith.constant 0 : i32
    %c0_i32_0 = arith.constant 0 : i32
    %c0_i32_1 = arith.constant 0 : i32
    return %c0_i32, %c0_i32_0 : i32, i32
  }
  func.func @transform_2(%arg0: i32, %arg1: i32) -> (i32, i32) {
    %c0_i32 = arith.constant 0 : i32
    %c0_i32_0 = arith.constant 0 : i32
    %c0_i32_1 = arith.constant 0 : i32
    return %c0_i32, %c0_i32_0 : i32, i32
  }
  func.func @transform_3(%arg0: i32, %arg1: i32) -> (i32, i32, i32) {
    %c0_i32 = arith.constant 0 : i32
    %c0_i32_0 = arith.constant 0 : i32
    return %arg0, %c0_i32, %arg1 : i32, i32, i32
  }
}

</mosaic_0001>

<bundles_post_ra>
// kernel: tpu_custom_call.1
= control target key start
LH: loop header
LB: loop body
LE: loop exit
PB: predicated region body
PF: predicated region fallthrough
CT: control target
= control target key end

     0   :  { %8 = vsyncpa [#allocation3], 0  ;;  %s1844_s0 = inlined_call_operand.hbm [shape: bf16[2,256,128], index: 0, kind: input, shape index: {}]   ;;  %s1845_s1 = inlined_call_operand.hbm [shape: bf16[256,256], index: 1, kind: input, shape index: {}]   ;;  %s1846_s2 = inlined_call_operand.hbm [shape: bf16[32,256], index: 2, kind: input, shape index: {}]   ;;  %s1847_s3 = inlined_call_operand.hbm [shape: f32[2,32,128], index: 3, kind: output, shape index: {}]  }
   0x1   :  { %10 = vsyncpa [#allocation3 + $0x1], 0 }
   0x2   :  { %11 = vsyncpa [#allocation6], 0 }
   0x3   :  { %12 = vsyncpa [#allocation4], 0 }
   0x4   :  { %14 = vsyncpa [#allocation4 + $0x1], 0  ;;  %s1561_s12 = smov 0   ;;  %s1563_s13 = smov 0  }
   0x5   :  { %s1565_s14 = smov 0   ;;  %s1567_s15 = smov 0  }
   0x6   :  { %s1569_s16 = smov 0   ;;  %s1571_s17 = smov 0  }
   0x7 LB: > { %s969_s18 = sadd.s32 4294967295, %s1529_s17   ;;  %s970_s19 = sadd.s32 4294967294, %s1529_s17   ;;  %s1529_s17 = sphi %s1571_s17, %s20_s17   ;;  %s1525_s16 = sphi %s1569_s16, %s1877_s16   ;;  %s1521_s15 = sphi %s1567_s15, %s1876_s15   ;;  %s1517_s14 = sphi %s1565_s14, %s1875_s14   ;;  %s1513_s13 = sphi %s1563_s13, %s1874_s13   ;;  %s1509_s12 = sphi %s1561_s12, %s1873_s12  }
   0x8   : > { %p54_p0 = scmp.ne.s32.totalorder %s1513_s13, %s1509_s12  ;;  %p1595_p1 = scmp.eq.s32.totalorder %s969_s18, 0 }
   0x9   : > { %p1599_p2 = scmp.eq.s32.totalorder %s969_s18, 1  ;;  %p128_p3 = scmp.eq.s32.totalorder %s970_s19, 1 }
   0xa   : > { %s1853_s20 = scalar_select %p1595_p1, 1, 0 }
   0xb   : > { %p1605_p4 = por %p1595_p1, %p54_p0  ;;  %p971_p5 = scmp.ge.s32.totalorder %s1529_s17, 1 }
   0xc   : > { %p1610_p6 = por %p128_p3, %p54_p0  ;;  %p135_p7 = scmp.lt.s32.totalorder %s1529_s17, 3 }
   0xd   : > { %s1855_s22 = scalar_select %p1605_p4, 1, 0 }
   0xe   : > { %s1856_s23 = scalar_select %p1610_p6, 1, 0 }
   0xf   : > { %p1615_p8 = pnand %p971_p5, %p135_p7  ;;  %s1531_s25 = smov [#allocation5]  }
  0x10   : > { %s147_s26 = sshll.u32 %s1531_s25, 4  ;;  %s1532_s28 = smov [#allocation7]   ;;  %s148_s26 = int_to_ptr.vmem [resolvable:$true] %s147_s26 }
  0x11   : > { %p1210_p9 = pneg %p1615_p8  ;;  %s160_s29 = sshll.u32 %s1532_s28, 4  ;;  %s161_s29 = int_to_ptr.vmem [resolvable:$true] %s160_s29 }
  0x12   : > { %s1376_s30 = scalar_lea.vmem %s148_s26, 4096  ;;  %p1384_p5 = scmp.lt.s32.totalorder %s148_s26, %s148_s26 }
  0x13   : > { %p1624_p11 = pnand %p1210_p9, %p1595_p1  ;;  %p1377_p13 = scmp.ne.s32.totalorder %s148_s26, %s1376_s30 }
  0x14   : > { %p1385_p7 = scmp.lt.s32.totalorder %s1376_s30, %s1376_s30 }
  0x15   : > { %p1367_p12 = pneg %p1624_p11 }
  0x16   : > { %p1386_p10 = por %p1385_p7, %p1384_p5 }
  0x17   : > { %p1379_p0 = pnand %p1377_p13, %p1367_p12 }
  0x19   : > { %p1380_p3 = pneg %p1379_p0 }
  0x1b   : > { %p1387_p9 = pnand %p1386_p10, %p1380_p3 }
  0x1d   : > { %1390 = shalt.err (!%p1387_p9)
}
  0x1e   : > { %s1533_s4 = smov 128   ;;  %s1534_s5 = smov 8  }
  0x1f   : > { %1213 = dma.hbm_to_vmem [thread:$0]  (!%p1624_p11), %s1845_s1, 4096, %s148_s26, [#allocation6], %s1533_s4, %s1533_s4, %s1534_s5  }
  0x20   : > { %s1402_s8 = scalar_lea.vmem %s161_s29, 512  ;;  %p1410_p1 = scmp.lt.s32.totalorder %s161_s29, %s161_s29 }
  0x21   : > { %p1403_p6 = scmp.ne.s32.totalorder %s161_s29, %s1402_s8  ;;  %p1411_p4 = scmp.lt.s32.totalorder %s1402_s8, %s1402_s8 }
  0x23   : > { %p1405_p13 = pnand %p1403_p6, %p1367_p12  ;;  %p1412_p5 = por %p1411_p4, %p1410_p1 }
  0x25   : > { %p1406_p0 = pneg %p1405_p13 }
  0x27   : > { %p1413_p10 = pnand %p1412_p5, %p1406_p0 }
  0x29   : > { %1416 = shalt.err (!%p1413_p10)
}
  0x2a   : > { %1216 = dma.hbm_to_vmem [thread:$0]  (!%p1624_p11), %s1846_s2, 512, %s161_s29, [#allocation6], %s1533_s4, %s1533_s4, %s1534_s5  }
  0x2b   : > { %s32_s11 = sadd.s32 1, %s1525_s16  ;;  %s41_s18 = sadd.s32 1, %s1517_s14 }
  0x2c   : > { %p34_p1 = scmp.ge.s32.totalorder %s32_s11, 2  ;;  %p48_p4 = scmp.ne.s32.totalorder %s1517_s14, %s1513_s13 }
  0x2d   : > { %p49_p6 = scmp.eq.s32.totalorder %s1529_s17, 0  ;;  %p1227_p12 = scmp.lt.s32.totalorder %s1529_s17, 2 }
  0x2e   : > { %s1879_s11 = smov (%p34_p1, %s32_s11), 0  ;;  %p1656_p7 = por %p1599_p2, %p48_p4 }
  0x2f   : > { %p50_p3 = por %p49_p6, %p48_p4  ;;  %s36_s25 = ssub.s32 %s1525_s16, %s1879_s11 }
  0x30   : > { %s174_s26 = sand.u32 1, %s1517_s14   ;;  %p39_p9 = scmp.eq.s32.totalorder %s36_s25, 0 }
  0x31   : > { %s975_s27 = sshll.u32 %s174_s26, 7  ;;  %s1040_s28 = sshll.u32 %s1525_s16, 11 }
  0x32   : > { %s1665_s29 = scalar_select %p39_p9, %s1517_s14, %s41_s18  }
  0x33   : > { %s185_s5 = scalar_lea.hbm %s1844_s0, %s1040_s28  ;;  %s178_s6 = scalar_lea.vmem [#allocation2], %s975_s27 }
  0x34   : > { %s186_s7 = sshll.u32 %s178_s6, 4  ;;  %p1672_p11 = pnand %p1227_p12, %p50_p3  ;;  %s187_s7 = int_to_ptr.vmem [resolvable:$true] %s186_s7 }
  0x35   : > { %s175_s8 = scalar_lea.sflag [#allocation3], %s174_s26  ;;  %s1430_s9 = scalar_lea.vmem %s187_s7, 2048 }
  0x36   : > { %p1419_p2 = pneg %p1672_p11  ;;  %p1431_p13 = scmp.ne.s32.totalorder %s187_s7, %s1430_s9 }
  0x37   : > { %s1535_s10 = smov [#allocation2]  }
  0x38   : > { %p1433_p0 = pnand %p1431_p13, %p1419_p2  ;;  %s1435_s18 = sshll.u32 %s1535_s10, 4  ;;  %s1436_s18 = int_to_ptr.vmem [resolvable:$false] %s1435_s18 }
  0x39   : > { %s1437_s25 = scalar_lea.vmem %s1436_s18, 4096  ;;  %p1438_p10 = scmp.lt.s32.totalorder %s187_s7, %s1436_s18 }
  0x3a   : > { %p1434_p5 = pneg %p1433_p0  ;;  %p1439_p1 = scmp.lt.s32.totalorder %s1437_s25, %s1430_s9 }
  0x3c   : > { %p1440_p4 = por %p1439_p1, %p1438_p10 }
  0x3e   : > { %p1441_p6 = pnand %p1440_p4, %p1434_p5 }
  0x40   : > { %1444 = shalt.err (!%p1441_p6)
}
  0x41   : > { %s1536_s27 = smov 64   ;;  %s1537_s28 = smov 4  }
  0x42   : > { %1220 = dma.hbm_to_vmem [thread:$0]  (!%p1672_p11), %s185_s5, 2048, %s187_s7, %s175_s8, %s1536_s27, %s1536_s27, %s1537_s28  }
  0x43   : > { %198 = sbr.rel (%p1615_p8) target bundleno = 645 (0x285), region = 32 }
  0x48   : > { %s1683_s26 = sand.u32 1, %s1513_s13   ;;  %p1861_p12 = scmp.ne.s32.totalorder %s1855_s22, 0 }
  0x49   : > { %s979_s30 = sshll.u32 %s1683_s26, 7  ;;  %s201_s4 = scalar_lea.sflag [#allocation3], %s1683_s26 }
  0x4a   : > { %s1687_s6 = scalar_lea.vmem [#allocation2], %s979_s30 }
  0x4b   : > { %1496 = dma.done.wait (%p1861_p12), %s201_s4, 2048  }
  0x4c   : > { %1498 = vsyncadd (%p1861_p12), %s201_s4, 4294965248  ;;  %p1862_p3 = scmp.ne.s32.totalorder %s1853_s20, 0 }
  0x4e   : > { %1500 = dma.done.wait (%p1862_p3), [#allocation6], 4608  }
  0x4f   : > { %1502 = vsyncadd (%p1862_p3), [#allocation6], 4294962688  ;;  %v1287_v0 = vld [vmem:[%s1687_s6 + $0x78] sm:$0xff]   ;;  %v1289_v2 = vld [vmem:[%s1687_s6 + $0x70] sm:$0xff]   ;;  %s982_s20 = sshll.u32 %s1683_s26, 5  ;;  %s1041_s5 = sshll.u32 %s1521_s15, 9 }
  0x50   : > { %v1288_v1 = vld [vmem:[%s1687_s6 + $0x38] sm:$0xff]   ;;  %1042 = vmatprep.subr.bf16.mxu0 %v1287_v0  ;;  %1182 = vmatprep.subr.bf16.mxu1 %v1287_v0  ;;  %v1290_v3 = vld [vmem:[%s1687_s6 + $0x30] sm:$0xff]   ;;  %v1291_v4 = vld [vmem:[%s1687_s6 + $0x68] sm:$0xff]   ;;  %s234_s22 = scalar_lea.vmem [#allocation8], %s982_s20  ;;  %s1796_s8 = scalar_lea.hbm %s1847_s3, %s1041_s5 }
  0x51   : > { %1043 = vmatpush3.bf16.msra.mxu0 %v1288_v1  ;;  %1190 = vmatpush3.bf16.msra.mxu1 %v1288_v1  ;;  %v1292_v5 = vld [vmem:[%s1687_s6 + $0x28] sm:$0xff]   ;;  %v1293_v6 = vld [vmem:[%s1687_s6 + $0x60] sm:$0xff]   ;;  %v1295_v8 = vld [vmem:[%s1687_s6 + $0x58] sm:$0xff]   ;;  %s865_s24 = sshll.u32 %s234_s22, 4  ;;  %s851_s9 = scalar_lea.sflag [#allocation4], %s1683_s26  ;;  %s1791_s24 = int_to_ptr.vmem [resolvable:$true] %s865_s24 }
  0x52   : > { %1044 = vmatprep.subr.bf16.mxu0 %v1289_v2  ;;  %1183 = vmatprep.subr.bf16.mxu1 %v1289_v2  ;;  %v1294_v7 = vld [vmem:[%s1687_s6 + $0x20] sm:$0xff]   ;;  %v1296_v9 = vld [vmem:[%s1687_s6 + $0x18] sm:$0xff]   ;;  %v1297_v10 = vld [vmem:[%s1687_s6 + $0x50] sm:$0xff]   ;;  %s1445_s10 = scalar_lea.vmem %s1791_s24, 512  ;;  %s1538_s15 = smov [#allocation8]  }
  0x53   : > { %v1305_v11 = vld [vmem:[#allocation5 + $0x4] ss:$8 sps:$4 sm:$0xff]   ;;  %v1308_v12 = vld [vmem:[#allocation5 + $0x94] ss:$8 sps:$4 sm:$0xff]   ;;  %v1303_v18 = vld [vmem:[#allocation5] ss:$8 sps:$4 sm:$0xff]   ;;  %p1446_p8 = scmp.ne.s32.totalorder %s1791_s24, %s1445_s10 }
  0x54   : > { %v1298_v13 = vld [vmem:[%s1687_s6 + $0x10] sm:$0xff]   ;;  %v1299_v14 = vld [vmem:[%s1687_s6 + $0x48] sm:$0xff]   ;;  %588 = vmatprep.mubr.bf16.mxu0 %v1305_v11  ;;  %660 = vmatprep.mubr.bf16.mxu1 %v1308_v12  ;;  %v1301_v16 = vld [vmem:[%s1687_s6 + $0x40] sm:$0xff]   ;;  %s1449_s18 = sshll.u32 %s1538_s15, 4  ;;  %s1450_s18 = int_to_ptr.vmem [resolvable:$false] %s1449_s18 }
  0x55   : > { %1045 = vmatpush3.bf16.msra.mxu0 %v1290_v3  ;;  %1191 = vmatpush3.bf16.msra.mxu1 %v1290_v3  ;;  %v1300_v15 = vld [vmem:[%s1687_s6 + $0x8] sm:$0xff]   ;;  %v1302_v17 = vld [vmem:[%s1687_s6] sm:$0xff]   ;;  %v1306_v19 = vld [vmem:[#allocation5 + $0x90] ss:$8 sps:$4 sm:$0xff]   ;;  %p1447_p9 = pnand %p1446_p8, %p1656_p7  ;;  %s1451_s25 = scalar_lea.vmem %s1450_s18, 1024 }
  0x56   : > { %1046 = vmatprep.subr.bf16.mxu0 %v1291_v4  ;;  %1184 = vmatprep.subr.bf16.mxu1 %v1291_v4  ;;  %v1309_v20 = vld [vmem:[#allocation5 + $0x14] ss:$8 sps:$4 sm:$0xff]   ;;  %v1312_v21 = vld [vmem:[#allocation5 + $0xa4] ss:$8 sps:$4 sm:$0xff]   ;;  %v1311_v22 = vld [vmem:[#allocation5 + $0x10] ss:$8 sps:$4 sm:$0xff]   ;;  %p1452_p2 = scmp.lt.s32.totalorder %s1791_s24, %s1450_s18  ;;  %p1453_p13 = scmp.lt.s32.totalorder %s1451_s25, %s1445_s10 }
  0x57   : > { %v1314_v23 = vld [vmem:[#allocation5 + $0xa0] ss:$8 sps:$4 sm:$0xff]   ;;  %v1315_v24 = vld [vmem:[#allocation5 + $0x24] ss:$8 sps:$4 sm:$0xff]   ;;  %v1318_v25 = vld [vmem:[#allocation5 + $0xb4] ss:$8 sps:$4 sm:$0xff]   ;;  %p1448_p11 = pneg %p1447_p9 }
  0x58   : > { %v1317_v26 = vld [vmem:[#allocation5 + $0x20] ss:$8 sps:$4 sm:$0xff]   ;;  %v1320_v27 = vld [vmem:[#allocation5 + $0xb0] ss:$8 sps:$4 sm:$0xff]   ;;  %v1321_v28 = vld [vmem:[#allocation5 + $0x34] ss:$8 sps:$4 sm:$0xff]   ;;  %p1454_p0 = por %p1453_p13, %p1452_p2 }
  0x59   : > { %1047 = vmatpush3.bf16.msra.mxu0 %v1292_v5  ;;  %1192 = vmatpush3.bf16.msra.mxu1 %v1292_v5  ;;  %v1324_v29 = vld [vmem:[#allocation5 + $0xc4] ss:$8 sps:$4 sm:$0xff]   ;;  %v1323_v30 = vld [vmem:[#allocation5 + $0x30] ss:$8 sps:$4 sm:$0xff]   ;;  %v1326_v31 = vld [vmem:[#allocation5 + $0xc0] ss:$8 sps:$4 sm:$0xff]  }
  0x5a   : > { %1048 = vmatprep.subr.bf16.mxu0 %v1293_v6  ;;  %1185 = vmatprep.subr.bf16.mxu1 %v1293_v6  ;;  %v1327_v32 = vld [vmem:[#allocation5 + $0x44] ss:$8 sps:$4 sm:$0xff]   ;;  %v1330_v33 = vld [vmem:[#allocation5 + $0xd4] ss:$8 sps:$4 sm:$0xff]   ;;  %v1329_v34 = vld [vmem:[#allocation5 + $0x40] ss:$8 sps:$4 sm:$0xff]   ;;  %p1455_p5 = pnand %p1454_p0, %p1448_p11 }
  0x5b   : > { %v1332_v35 = vld [vmem:[#allocation5 + $0xd0] ss:$8 sps:$4 sm:$0xff]   ;;  %v1333_v36 = vld [vmem:[#allocation5 + $0x54] ss:$8 sps:$4 sm:$0xff]   ;;  %v1336_v37 = vld [vmem:[#allocation5 + $0xe4] ss:$8 sps:$4 sm:$0xff]  }
  0x5c   : > { %v1335_v38 = vld [vmem:[#allocation5 + $0x50] ss:$8 sps:$4 sm:$0xff]   ;;  %v1338_v39 = vld [vmem:[#allocation5 + $0xe0] ss:$8 sps:$4 sm:$0xff]   ;;  %v1339_v40 = vld [vmem:[#allocation5 + $0x64] ss:$8 sps:$4 sm:$0xff]  }
  0x5d   : > { %1049 = vmatpush3.bf16.msra.mxu0 %v1294_v7  ;;  %1193 = vmatpush3.bf16.msra.mxu1 %v1294_v7  ;;  %v1342_v41 = vld [vmem:[#allocation5 + $0xf4] ss:$8 sps:$4 sm:$0xff]   ;;  %v1341_v42 = vld [vmem:[#allocation5 + $0x60] ss:$8 sps:$4 sm:$0xff]   ;;  %v1344_v43 = vld [vmem:[#allocation5 + $0xf0] ss:$8 sps:$4 sm:$0xff]  }
  0x5e   : > { %1050 = vmatprep.subr.bf16.mxu0 %v1295_v8  ;;  %1186 = vmatprep.subr.bf16.mxu1 %v1295_v8  ;;  %v1345_v44 = vld [vmem:[#allocation5 + $0x74] ss:$8 sps:$4 sm:$0xff]   ;;  %v1347_v45 = vld [vmem:[#allocation5 + $0x70] ss:$8 sps:$4 sm:$0xff]   ;;  %v1348_v46 = vld [vmem:[#allocation5 + $0x84] ss:$8 sps:$4 sm:$0xff]  }
  0x5f   : > { %v1350_v47 = vld [vmem:[#allocation5 + $0x80] ss:$8 sps:$4 sm:$0xff]   ;;  %v1353_v48 = vld [vmem:[#allocation7 + $0x4] ss:$8 sps:$4 sm:$0xff]  }
  0x61   : > { %1051 = vmatpush3.bf16.msra.mxu0 %v1296_v9  ;;  %1194 = vmatpush3.bf16.msra.mxu1 %v1296_v9 }
  0x62   : > { %1052 = vmatprep.subr.bf16.mxu0 %v1297_v10  ;;  %1187 = vmatprep.subr.bf16.mxu1 %v1297_v10 }
  0x65   : > { %1053 = vmatpush3.bf16.msra.mxu0 %v1298_v13  ;;  %1195 = vmatpush3.bf16.msra.mxu1 %v1298_v13 }
  0x66   : > { %1054 = vmatprep.subr.bf16.mxu0 %v1299_v14  ;;  %1188 = vmatprep.subr.bf16.mxu1 %v1299_v14 }
  0x69   : > { %1055 = vmatpush3.bf16.msra.mxu0 %v1300_v15  ;;  %1196 = vmatpush3.bf16.msra.mxu1 %v1300_v15 }
  0x6a   : > { %1056 = vmatprep.subr.bf16.mxu0 %v1301_v16  ;;  %1189 = vmatprep.subr.bf16.mxu1 %v1301_v16 }
  0x6d   : > { %1057 = vmatpush3.bf16.msra.mxu0 %v1302_v17  ;;  %1197 = vmatpush3.bf16.msra.mxu1 %v1302_v17 }
  0x70   : > { %589 = vmatmul.mubr.bf16.vlgmr.msra.gmra.mxu0 %v1303_v18  ;;  %661 = vmatmul.mubr.bf16.vlgmr.msra.gmra.mxu1 %v1306_v19 }
  0x71   : > { %596 = vmatprep.mubr.bf16.mxu0 %v1309_v20  ;;  %668 = vmatprep.mubr.bf16.mxu1 %v1312_v21 }
  0x78   : > { %597 = vmatmul.mubr.bf16.gmra.mxu0 %v1311_v22  ;;  %669 = vmatmul.mubr.bf16.gmra.mxu1 %v1314_v23 }
  0x79   : > { %604 = vmatprep.mubr.bf16.mxu0 %v1315_v24  ;;  %676 = vmatprep.mubr.bf16.mxu1 %v1318_v25 }
  0x80   : > { %605 = vmatmul.mubr.bf16.gmra.mxu0 %v1317_v26  ;;  %677 = vmatmul.mubr.bf16.gmra.mxu1 %v1320_v27 }
  0x81   : > { %612 = vmatprep.mubr.bf16.mxu0 %v1321_v28  ;;  %684 = vmatprep.mubr.bf16.mxu1 %v1324_v29 }
  0x88   : > { %613 = vmatmul.mubr.bf16.gmra.mxu0 %v1323_v30  ;;  %685 = vmatmul.mubr.bf16.gmra.mxu1 %v1326_v31 }
  0x89   : > { %620 = vmatprep.mubr.bf16.mxu0 %v1327_v32  ;;  %692 = vmatprep.mubr.bf16.mxu1 %v1330_v33 }
  0x90   : > { %621 = vmatmul.mubr.bf16.gmra.mxu0 %v1329_v34  ;;  %693 = vmatmul.mubr.bf16.gmra.mxu1 %v1332_v35 }
  0x91   : > { %628 = vmatprep.mubr.bf16.mxu0 %v1333_v36  ;;  %700 = vmatprep.mubr.bf16.mxu1 %v1336_v37 }
  0x98   : > { %629 = vmatmul.mubr.bf16.gmra.mxu0 %v1335_v38  ;;  %701 = vmatmul.mubr.bf16.gmra.mxu1 %v1338_v39 }
  0x99   : > { %636 = vmatprep.mubr.bf16.mxu0 %v1339_v40  ;;  %708 = vmatprep.mubr.bf16.mxu1 %v1342_v41 }
  0xa0   : > { %637 = vmatmul.mubr.bf16.gmra.mxu0 %v1341_v42  ;;  %709 = vmatmul.mubr.bf16.gmra.mxu1 %v1344_v43 }
  0xa1   : > { %644 = vmatprep.mubr.bf16.mxu0 %v1345_v44  ;;  %821 = vmatprep.mubr.bf16.mxu1 %v1353_v48 }
  0xa8   : > { %645 = vmatmul.mubr.bf16.gmra.mxu0 %v1347_v45 }
  0xa9   : > { %652 = vmatprep.mubr.bf16.mxu0 %v1348_v46 }
  0xb0   : > { %653 = vmatmul.mubr.bf16.gmra.mxu0 %v1350_v47 }
 0x130   : > { %v1058_v49 = vpop.f32.mrf.mxu0  ;;  %v1112_v50 = vpop.f32.mrf.mxu1 }
 0x132   : > { %v1059_v51 = vpop.f32.mrf.mxu0  ;;  %v1113_v52 = vpop.f32.mrf.mxu1 }
 0x133   : > { %v1060_v53 = vadd.f32 %v1059_v51, %v1058_v49  ;;  %v1114_v54 = vadd.f32 %v1113_v52, %v1112_v50 }
 0x134   : > { %v1061_v55 = vpop.f32.mrf.mxu0  ;;  %v1115_v56 = vpop.f32.mrf.mxu1 }
 0x135   : > { %v1713_v59 = vmul.f32 %v1114_v54, %v1114_v54  ;;  %v1715_v0 = vmul.f32 %v1060_v53, %v1060_v53 }
 0x136   : > { %v1062_v57 = vpop.f32.mrf.mxu0  ;;  %v1116_v58 = vpop.f32.mrf.mxu1 }
 0x137   : > { %v1063_v60 = vadd.f32 %v1062_v57, %v1061_v55  ;;  %v1117_v61 = vadd.f32 %v1116_v58, %v1115_v56  ;;  %1863 = vst [vmem:[#allocation12_spill] sm:$0xff] %v1715_v0 }
 0x138   : > { %v1064_v62 = vpop.f32.mrf.mxu0  ;;  %v1118_v63 = vpop.f32.mrf.mxu1 }
 0x139   : > { %v1717_v1 = vmul.f32 %v1063_v60, %v1063_v60  ;;  %v1719_v2 = vmul.f32 %v1117_v61, %v1117_v61 }
 0x13a   : > { %v1065_v3 = vpop.f32.mrf.mxu0  ;;  %v1119_v4 = vpop.f32.mrf.mxu1 }
 0x13b   : > { %1864 = vst [vmem:[#allocation13_spill] sm:$0xff] %v1717_v1  ;;  %v1066_v7 = vadd.f32 %v1065_v3, %v1064_v62  ;;  %v1120_v8 = vadd.f32 %v1119_v4, %v1118_v63 }
 0x13c   : > { %v1067_v9 = vpop.f32.mrf.mxu0  ;;  %v1121_v10 = vpop.f32.mrf.mxu1 }
 0x13d   : > { %v1725_v13 = vmul.f32 %v1120_v8, %v1120_v8  ;;  %v1729_v18 = vmul.f32 %v1066_v7, %v1066_v7 }
 0x13e   : > { %v1068_v11 = vpop.f32.mrf.mxu0  ;;  %v1122_v12 = vpop.f32.mrf.mxu1 }
 0x13f   : > { %v1069_v14 = vadd.f32 %v1068_v11, %v1067_v9  ;;  %v1123_v15 = vadd.f32 %v1122_v12, %v1121_v10 }
 0x140   : > { %v1070_v16 = vpop.f32.mrf.mxu0  ;;  %v1727_v17 = vpop.f32.mrf.mxu1 }
 0x141   : > { %v1731_v19 = vmul.f32 %v1069_v14, %v1069_v14  ;;  %v1733_v20 = vmul.f32 %v1123_v15, %v1123_v15 }
 0x142   : > { %v1071_v21 = vpop.f32.mrf.mxu0  ;;  %v1735_v22 = vpop.f32.mrf.mxu1 }
 0x143   : > { %v1741_v25 = vadd.f32 %v1071_v21, %v1070_v16 }
 0x144   : > { %v1743_v26 = vpop.f32.mrf.mxu0  ;;  %v1745_v27 = vpop.f32.mrf.mxu1 }
 0x146   : > { %v1747_v28 = vpop.f32.mrf.mxu0  ;;  %v1749_v29 = vpop.f32.mrf.mxu1 }
 0x148   : > { %v1751_v30 = vpop.f32.mrf.mxu0  ;;  %v1130_v31 = vpop.f32.mrf.mxu1 }
 0x14a   : > { %v1753_v32 = vpop.f32.mrf.mxu0  ;;  %v1131_v33 = vpop.f32.mrf.mxu1 }
 0x14c   : > { %v1755_v34 = vpop.f32.mrf.mxu0  ;;  %v1133_v35 = vpop.f32.mrf.mxu1 }
 0x14e   : > { %v1757_v36 = vpop.f32.mrf.mxu0  ;;  %v1134_v37 = vpop.f32.mrf.mxu1 }
 0x150   : > { %v1759_v38 = vpop.f32.mrf.mxu0  ;;  %v1136_v39 = vpop.f32.mrf.mxu1 }
 0x152   : > { %v1761_v40 = vpop.f32.mrf.mxu0  ;;  %v1137_v41 = vpop.f32.mrf.mxu1 }
 0x153   : > { %v1138_v23 = vadd.f32 %v1137_v41, %v1136_v39  ;;  %v1126_v39 = vadd.f32 %v1735_v22, %v1727_v17 }
 0x154   : > { %v1085_v42 = vpop.f32.mrf.mxu0  ;;  %v1139_v43 = vpop.f32.mrf.mxu1 }
 0x156   : > { %v1086_v44 = vpop.f32.mrf.mxu0  ;;  %v1140_v45 = vpop.f32.mrf.mxu1 }
 0x157   : > { %v1087_v41 = vadd.f32 %v1086_v44, %v1085_v42 }
 0x158   : > { %v1088_v46 = vpop.f32.mrf.mxu0  ;;  %v1142_v47 = vpop.f32.mrf.mxu1 }
 0x159   : > { %v726_v17 = vmul.f32 %v1087_v41, %v1087_v41 }
 0x15a   : > { %v1089_v48 = vpop.f32.mrf.mxu0  ;;  %v1143_v49 = vpop.f32.mrf.mxu1 }
 0x15b   : > { %v1144_v11 = vadd.f32 %v1143_v49, %v1142_v47  ;;  %v743_v47 = vmul.f32 %v1138_v23, %v1138_v23 }
 0x15c   : > { %v1091_v50 = vpop.f32.mrf.mxu0  ;;  %v1145_v51 = vpop.f32.mrf.mxu1 }
 0x15e   : > { %v1092_v52 = vpop.f32.mrf.mxu0  ;;  %v1146_v53 = vpop.f32.mrf.mxu1 }
 0x15f   : > { %v1147_v12 = vadd.f32 %v1146_v53, %v1145_v51  ;;  %v1090_v53 = vadd.f32 %v1089_v48, %v1088_v46 }
 0x160   : > { %v1094_v54 = vpop.f32.mrf.mxu0  ;;  %v1148_v55 = vpop.f32.mrf.mxu1 }
 0x161   : > { %v746_v6 = vmul.f32 %v1147_v12, %v1147_v12  ;;  %v727_v23 = vmul.f32 %v1090_v53, %v1090_v53  ;;  %v1869_v12 = vld [vmem:[#allocation12_spill] sm:$0xff] }
 0x162   : > { %v1095_v56 = vpop.f32.mrf.mxu0  ;;  %v1149_v57 = vpop.f32.mrf.mxu1 }
 0x163   : > { %v1150_v58 = vadd.f32 %v1149_v57, %v1148_v55  ;;  %v1141_v55 = vadd.f32 %v1140_v45, %v1139_v43  ;;  %v745_v57 = vmul.f32 %v1144_v11, %v1144_v11  ;;  %v1096_v24 = vadd.f32 %v1095_v56, %v1094_v54  ;;  %v1868_v11 = vld [vmem:[#allocation13_spill] sm:$0xff] }
 0x164   : > { %v1097_v60 = vpop.f32.mrf.mxu0  ;;  %v1151_v61 = vpop.f32.mrf.mxu1 }
 0x165   : > { %v747_v3 = vmul.f32 %v1150_v58, %v1150_v58  ;;  %v744_v49 = vmul.f32 %v1141_v55, %v1141_v55  ;;  %v763_v51 = vpack.c.bf16 %v746_v6, %v745_v57  ;;  %v1084_v6 = vadd.f32 %v1761_v40, %v1759_v38 }
 0x166   : > { %v1098_v62 = vpop.f32.mrf.mxu0  ;;  %v1152_v63 = vpop.f32.mrf.mxu1  ;;  %v1075_v38 = vadd.f32 %v1747_v28, %v1743_v26 }
 0x167   : > { %v1153_v4 = vadd.f32 %v1152_v63, %v1151_v61  ;;  %v1099_v21 = vadd.f32 %v1098_v62, %v1097_v60  ;;  %v1132_v61 = vadd.f32 %v1131_v33, %v1130_v31  ;;  %v1093_v63 = vadd.f32 %v1092_v52, %v1091_v50 }
 0x168   : > { %v1100_v7 = vpop.f32.mrf.mxu0  ;;  %v762_v33 = vpack.c.bf16 %v744_v49, %v743_v47 }
 0x169   : > { %v748_v8 = vmul.f32 %v1153_v4, %v1153_v4  ;;  %v730_v4 = vmul.f32 %v1099_v21, %v1099_v21  ;;  %v728_v43 = vmul.f32 %v1093_v63, %v1093_v63  ;;  %v741_v31 = vmul.f32 %v1132_v61, %v1132_v61 }
 0x16a   : > { %v1101_v9 = vpop.f32.mrf.mxu0 }
 0x16b   : > { %v764_v10 = vpack.c.bf16 %v748_v8, %v747_v3  ;;  %v1102_v15 = vadd.f32 %v1101_v9, %v1100_v7  ;;  %v1135_v3 = vadd.f32 %v1134_v37, %v1133_v35  ;;  %v729_v7 = vmul.f32 %v1096_v24, %v1096_v24 }
 0x16c   : > { %v1103_v14 = vpop.f32.mrf.mxu0  ;;  %v1081_v24 = vadd.f32 %v1757_v36, %v1755_v34  ;;  %v754_v22 = vpack.c.bf16 %v728_v43, %v727_v23  ;;  %v739_v35 = vmul.f32 %v1126_v39, %v1126_v39  ;;  %v722_v36 = vmul.f32 %v1075_v38, %v1075_v38 }
 0x16d   : > { %1154 = vmatprep.subr.bf16.mxu1 %v764_v10  ;;  %v731_v0 = vmul.f32 %v1102_v15, %v1102_v15  ;;  %v755_v45 = vpack.c.bf16 %v730_v4, %v729_v7  ;;  %v1866_v8 = vpack.c.bf16 %v1719_v2, %v1713_v59  ;;  %v1867_v10 = vpack.c.bf16 %v1731_v19, %v1729_v18 }
 0x16e   : > { %v1104_v16 = vpop.f32.mrf.mxu0  ;;  %v724_v40 = vmul.f32 %v1081_v24, %v1081_v24 }
 0x16f   : > { %v1105_v5 = vadd.f32 %v1104_v16, %v1103_v14  ;;  %v1870_v14 = vpack.c.bf16 %v1868_v11, %v1869_v12 }
 0x170   : > { %v1106_v60 = vpop.f32.mrf.mxu0 }
 0x171   : > { %v732_v58 = vmul.f32 %v1105_v5, %v1105_v5  ;;  %v1129_v5 = vadd.f32 %v1749_v29, %v1745_v27  ;;  %v1078_v27 = vadd.f32 %v1753_v32, %v1751_v30  ;;  %v725_v29 = vmul.f32 %v1084_v6, %v1084_v6 }
 0x172   : > { %v721_v30 = vmul.f32 %v1741_v25, %v1741_v25  ;;  %v1865_v32 = vpack.c.bf16 %v1733_v20, %v1725_v13  ;;  %v1351_v25 = vld [vmem:[#allocation7] ss:$8 sps:$4 sm:$0xff]   ;;  %v1354_v13 = vld [vmem:[#allocation7 + $0x14] ss:$8 sps:$4 sm:$0xff]   ;;  %v1356_v20 = vld [vmem:[#allocation7 + $0x10] ss:$8 sps:$4 sm:$0xff]  }
 0x173   : > { %v756_v1 = vpack.c.bf16 %v732_v58, %v731_v0  ;;  %v742_v0 = vmul.f32 %v1135_v3, %v1135_v3  ;;  %v740_v37 = vmul.f32 %v1129_v5, %v1129_v5  ;;  %v753_v46 = vpack.c.bf16 %v726_v17, %v725_v29 }
 0x174   : > { %v723_v50 = vmul.f32 %v1078_v27, %v1078_v27  ;;  %v751_v26 = vpack.c.bf16 %v722_v36, %v721_v30 }
 0x175   : > { %1155 = vmatpush3.bf16.msra.mxu1 %v756_v1  ;;  %v1107_v1 = vpop.f32.mrf.mxu0  ;;  %v761_v42 = vpack.c.bf16 %v742_v0, %v741_v31  ;;  %v760_v48 = vpack.c.bf16 %v740_v37, %v739_v35 }
 0x176   : > { %1156 = vmatprep.subr.bf16.mxu1 %v763_v51  ;;  %v752_v52 = vpack.c.bf16 %v724_v40, %v723_v50  ;;  %v1108_v54 = vadd.f32 %v1107_v1, %v1106_v60 }
 0x177   : > { %v1109_v44 = vpop.f32.mrf.mxu0 }
 0x178   : > { %v733_v28 = vmul.f32 %v1108_v54, %v1108_v54 }
 0x179   : > { %1157 = vmatpush3.bf16.msra.mxu1 %v755_v45  ;;  %v1110_v34 = vpop.f32.mrf.mxu0 }
 0x17a   : > { %1158 = vmatprep.subr.bf16.mxu1 %v762_v33  ;;  %v1111_v56 = vadd.f32 %v1110_v34, %v1109_v44 }
 0x17c   : > { %v734_v62 = vmul.f32 %v1111_v56, %v1111_v56 }
 0x17d   : > { %1159 = vmatpush3.bf16.msra.mxu1 %v754_v22 }
 0x17e   : > { %1160 = vmatprep.subr.bf16.mxu1 %v761_v42  ;;  %v757_v9 = vpack.c.bf16 %v734_v62, %v733_v28 }
 0x181   : > { %1161 = vmatpush3.bf16.msra.mxu1 %v753_v46 }
 0x182   : > { %1162 = vmatprep.subr.bf16.mxu1 %v760_v48 }
 0x185   : > { %1163 = vmatpush3.bf16.msra.mxu1 %v752_v52 }
 0x186   : > { %1164 = vmatprep.subr.bf16.mxu1 %v1865_v32 }
 0x189   : > { %1165 = vmatpush3.bf16.msra.mxu1 %v751_v26 }
 0x18a   : > { %1166 = vmatprep.subr.bf16.mxu1 %v1866_v8 }
 0x18d   : > { %1167 = vmatpush3.bf16.msra.mxu1 %v1867_v10 }
 0x18e   : > { %1168 = vmatprep.subr.bf16.mxu1 %v757_v9 }
 0x191   : > { %1169 = vmatpush3.bf16.msra.mxu1 %v1870_v14 }
 0x194   : > { %822 = vmatmul.mubr.bf16.vlgmr.msra.gmra.mxu1 %v1351_v25 }
 0x195   : > { %829 = vmatprep.mubr.bf16.mxu1 %v1354_v13 }
 0x19c   : > { %830 = vmatmul.mubr.bf16.gmra.mxu1 %v1356_v20 }
 0x254   : > { %v1170_v15 = vpop.f32.mrf.mxu1 }
 0x256   : > { %v1171_v16 = vpop.f32.mrf.mxu1 }
 0x257   : > { %v1172_v59 = vadd.f32 %v1171_v16, %v1170_v15 }
 0x258   : > { %v1173_v2 = vpop.f32.mrf.mxu1 }
 0x259   : > { %v824_v21 = vadd.f32 1e-09, %v1172_v59 }
 0x25a   : > { %v1174_v55 = vpop.f32.mrf.mxu1 }
 0x25b   : > { %1357 = vlog2.f32 %v824_v21  ;;  %v1175_v18 = vadd.f32 %v1174_v55, %v1173_v2 }
 0x25c   : > { %v1176_v19 = vpop.f32.mrf.mxu1 }
 0x25d   : > { %v827_v57 = vadd.f32 1e-09, %v1175_v18 }
 0x25e   : > { %v1177_v58 = vpop.f32.mrf.mxu1 }
 0x25f   : > { %1359 = vlog2.f32 %v827_v57  ;;  %v1178_v61 = vadd.f32 %v1177_v58, %v1176_v19 }
 0x260   : > { %v1179_v63 = vpop.f32.mrf.mxu1 }
 0x261   : > { %v832_v4 = vadd.f32 1e-09, %v1178_v61 }
 0x262   : > { %v1180_v3 = vpop.f32.mrf.mxu1 }
 0x263   : > { %1361 = vlog2.f32 %v832_v4  ;;  %v1181_v47 = vadd.f32 %v1180_v3, %v1179_v63 }
 0x265   : > { %v835_v49 = vadd.f32 1e-09, %v1181_v47 }
 0x267   : > { %1363 = vlog2.f32 %v835_v49 }
 0x268   : > { %v1358_v51 = vpop.eup %1357 }
 0x269   : > { %v839_v53 = vmul.f32 0.6931472, %v1358_v51 }
 0x26b   : > { %846 = vst [vmem:[%s234_s22] sm:$0xff] %v839_v53 }
 0x26c   : > { %v1360_v7 = vpop.eup %1359 }
 0x26d   : > { %v841_v60 = vmul.f32 0.6931472, %v1360_v7 }
 0x26f   : > { %847 = vst [vmem:[%s234_s22 + $0x8] sm:$0xff] %v841_v60 }
 0x270   : > { %v1362_v39 = vpop.eup %1361 }
 0x271   : > { %v843_v41 = vmul.f32 0.6931472, %v1362_v39 }
 0x273   : > { %848 = vst [vmem:[%s234_s22 + $0x10] sm:$0xff] %v843_v41 }
 0x274   : > { %v1364_v43 = vpop.eup %1363 }
 0x275   : > { %v845_v45 = vmul.f32 0.6931472, %v1364_v43 }
 0x277   : > { %849 = vst [vmem:[%s234_s22 + $0x18] sm:$0xff] %v845_v45 }
 0x278   : > { %1458 = shalt.err (!%p1455_p5)
}
 0x279   : > { %s1459_s27 = scalar_lea.hbm %s1796_s8, 512  ;;  %s1463_s4 = scalar_lea.hbm %s1847_s3, 1024 }
 0x27a   : > { %p1460_p10 = scmp.ne.s32.totalorder %s1796_s8, %s1459_s27  ;;  %p1464_p6 = scmp.lt.s32.totalorder %s1796_s8, %s1847_s3 }
 0x27b   : > { %p1465_p12 = scmp.lt.s32.totalorder %s1463_s4, %s1459_s27 }
 0x27c   : > { %p1461_p1 = pnand %p1460_p10, %p1656_p7 }
 0x27d   : > { %p1466_p3 = por %p1465_p12, %p1464_p6 }
 0x27e   : > { %p1462_p4 = pneg %p1461_p1 }
 0x280   : > { %p1467_p8 = pnand %p1466_p3, %p1462_p4 }
 0x282   : > { %1470 = shalt.err (!%p1467_p8)
}
 0x283   : > { %s1539_s22 = smov 128   ;;  %s1540_s5 = smov 8  }
 0x284   : > { %1208 = dma.vmem_to_hbm [thread:$0]  (%p1656_p7), %s1791_s24, 512, %s1796_s8, %s851_s9, %s1539_s22, %s1539_s22, %s1540_s5  }
 0x285 PF: > { %s880_s7 = sand.u32 1, %s1509_s12   ;;  %p1871_p9 = scmp.ne.s32.totalorder %s1856_s23, 0 }
 0x286   : > { %p1872_p11 = scmp.ge.s32.totalorder %s1529_s17, 2  ;;  %s881_s21 = scalar_lea.sflag [#allocation4], %s880_s7 }
 0x288   : > { %p1222_p2 = pnand %p1872_p11, %p1871_p9 }
 0x28a   : > { %p1223_p13 = pneg %p1222_p2 }
 0x28c   : > { %1504 = dma.done.wait (%p1223_p13), %s881_s21, 512  }
 0x28d   : > { %1506 = vsyncadd (%p1223_p13), %s881_s21, 4294966784  ;;  %s20_s17 = sadd.s32 1, %s1529_s17   ;;  %s1873_s12 = smov %s1513_s13 }
 0x28e   : > { %p17_p0 = scmp.ge.s32.totalorder %s20_s17, 4   ;;  %s1874_s13 = smov %s1517_s14 }
 0x28f   : > { %s1875_s14 = smov %s1665_s29  ;;  %s1876_s15 = smov %s1525_s16 }
 0x290   : > { %s1877_s16 = smov %s1879_s11  ;;  %19 = sbr.rel (!%p17_p0) target bundleno = 7 (0x7), region = 85 }
 0x295   :  { %886 = vsyncpa [#allocation3], 1 }
 0x296   :  { %888 = vsyncpa [#allocation3 + $0x1], 1 }
 0x297   :  { %889 = vsyncpa [#allocation6], 1 }
 0x298   :  { %890 = vsyncpa [#allocation4], 1 }
 0x299   :  { %892 = vsyncpa [#allocation4 + $0x1], 1 }

</bundles_post_ra>
